<compile_context>
chip_gen: v6e
topology: v6e:2x2x1
jax: 0.10.0
libtpu: 0.0.40
codegen_flags: <defaults>
</compile_context>

<pallas_src>
import functools

import jax
import jax.numpy as jnp
from jax.experimental import pallas as pl
from jax.experimental.pallas import tpu as pltpu

HIDDEN = 24  # nn.Linear(state_size, 24) / (24, 24) / (24, action_size)


def _round_up(n, m):
    return ((n + m - 1) // m) * m


# ----------------------------- Pallas kernel -------------------------------

def _dqn_mlp_kernel(x_ref, w1_ref, b1_ref, w2_ref, b2_ref, w3_ref, b3_ref,
                    out_ref):
    """Fused 3-layer MLP.

    x_ref:  (TB, S)   f32, narrow (no lane padding)
    w1_ref: (S, Hp)   f32  -> layer 1 done as S broadcast FMAs on the VPU
    w2_ref: (Hp, Hp)  f32  -> MXU
    w3_ref: (Hp, Ap)  f32  -> MXU; result sliced to the real action lanes
    out_ref:(TB, A)   f32, narrow
    """
    x = x_ref[...]                      # (TB, S)
    w1 = w1_ref[...]                    # (S, Hp)
    S = x.shape[1]

    # Layer 1: h1 = relu(b1 + sum_k x[:, k] * w1[k, :])  -- no MXU, no padded x.
    h1 = b1_ref[...]                    # (1, Hp), broadcasts on first add
    for k in range(S):                  # S is tiny (static) -> unrolled FMAs
        h1 = h1 + x[:, k:k + 1] * w1[k:k + 1, :]
    h1 = jnp.maximum(h1, 0.0)           # (TB, Hp)

    # Layer 2: standard 128x128 MXU matmul, f32 accumulate.
    h2 = jnp.dot(h1, w2_ref[...], preferred_element_type=jnp.float32)
    h2 = jnp.maximum(h2 + b2_ref[...], 0.0)

    # Layer 3: MXU matmul against the 128-lane padded W3, then slice down to
    # the real action lanes and store narrow.
    out = jnp.dot(h2, w3_ref[...], preferred_element_type=jnp.float32)
    out = out + b3_ref[...]
    A = out_ref.shape[1]
    out_ref[...] = out[:, :A].astype(out_ref.dtype)


# --------------------- One-time parameter packing ---------------------------

def pack_dqn_params(params, state_size, action_size):
    """Transpose to [in, out] and zero-pad the *hidden/output* dims once.

    w1 stays narrow (state_size rows) for the VPU-FMA layer-1 path.
    Hidden dim padded to 128 only (do NOT pad to 256 'for the MXU').
    """
    (w1, b1), (w2, b2), (w3, b3) = params
    Hp = max(_round_up(HIDDEN, 128), 128)        # 128
    Ap = max(_round_up(action_size, 128), 128)   # 128 (output stored narrow)

    def pad2(a, r, c):
        return jnp.zeros((r, c), jnp.float32).at[
            : a.shape[0], : a.shape[1]].set(a.astype(jnp.float32))

    return {
        "w1t": pad2(w1.T, state_size, Hp),   # (S, Hp)  narrow
        "w2t": pad2(w2.T, Hp, Hp),           # (Hp, Hp)
        "w3t": pad2(w3.T, Hp, Ap),           # (Hp, Ap)
        "b1": pad2(b1[None, :], 1, Hp),
        "b2": pad2(b2[None, :], 1, Hp),
        "b3": pad2(b3[None, :], 1, Ap),
    }


# ------------------------------ Forward pass --------------------------------

@functools.partial(jax.jit, static_argnames=("state_size", "action_size"))
def dqn_forward(x, packed, *, state_size, action_size):
    """Pallas-backed forward pass; `packed` comes from pack_dqn_params."""
    B = x.shape[0]
    S = state_size
    Hp = packed["w2t"].shape[0]
    Ap = packed["w3t"].shape[1]
    f32 = jnp.float32

    # Batch tiling:
    #  * B < 16:          single tile
    #  * 16 <= B <= 1024: exactly 2 tiles -> both v7x TensorCores get work
    #  * B > 1024:        512-row tiles (mult. of 256 for v6e/v7x, 128 for v5e)
    if B < 16:
        TB = max(_round_up(B, 8), 8)
        Bp = TB
    elif B <= 1024:
        TB = _round_up((B + 1) // 2, 8)
        Bp = 2 * TB
    else:
        TB = 512
        Bp = _round_up(B, TB)
    n_tiles = Bp // TB

    # Only pad batch rows; the feature dim stays narrow (no 128-lane pad of x).
    x_p = x.astype(f32)
    if Bp != B:
        x_p = jnp.zeros((Bp, S), f32).at[:B].set(x_p)

    # Constant index_map -> weights DMA'd once, VMEM-resident across tiles.
    def w_spec(shape):
        return pl.BlockSpec(shape, lambda i: (0, 0))

    out_p = pl.pallas_call(
        _dqn_mlp_kernel,
        out_shape=jax.ShapeDtypeStruct((Bp, action_size), f32),
        grid=(n_tiles,),
        in_specs=[
            pl.BlockSpec((TB, S), lambda i: (i, 0)),   # x: narrow, batch-tiled
            w_spec((S, Hp)), w_spec((1, Hp)),
            w_spec((Hp, Hp)), w_spec((1, Hp)),
            w_spec((Hp, Ap)), w_spec((1, Ap)),
        ],
        out_specs=pl.BlockSpec((TB, action_size), lambda i: (i, 0)),  # narrow
        compiler_params=pltpu.CompilerParams(
            dimension_semantics=("parallel",)),
    )(x_p, packed["w1t"], packed["b1"], packed["w2t"], packed["b2"],
      packed["w3t"], packed["b3"])

    # Padded batch rows hold relu(b) garbage -> trim rows only (cols already
    # narrow, no column slice needed).
    return out_p[:B] if Bp != B else out_p


# ------------------------- Deterministic init ------------------------------

def init_dqn_params(key, state_size, action_size):
    """PyTorch-style nn.Linear init: U(-1/sqrt(fan_in), 1/sqrt(fan_in))."""
    dims = [(HIDDEN, state_size), (HIDDEN, HIDDEN), (action_size, HIDDEN)]
    params = []
    for (out_f, in_f) in dims:
        key, kw, kb = jax.random.split(key, 3)
        bound = 1.0 / jnp.sqrt(jnp.float32(in_f))
        w = jax.random.uniform(kw, (out_f, in_f), jnp.float32, -bound, bound)
        b = jax.random.uniform(kb, (out_f,), jnp.float32, -bound, bound)
        params.append((w, b))
    return params


def dqn_forward_ref(x, params):
    """Pure-JAX f32 reference for correctness checking."""
    (w1, b1), (w2, b2), (w3, b3) = params
    h = jnp.maximum(x @ w1.T + b1, 0.0)
    h = jnp.maximum(h @ w2.T + b2, 0.0)
    return h @ w3.T + b3


# --------------------------------- Main -------------------------------------

if __name__ == "__main__":
    state_size = 4
    action_size = 2

    key = jax.random.PRNGKey(0)
    kx, kx2, kp = jax.random.split(key, 3)
    params = init_dqn_params(kp, state_size, action_size)

    # One-time packing (outside the per-step hot path).
    packed = pack_dqn_params(params, state_size, action_size)
    packed = jax.tree_util.tree_map(jax.block_until_ready, packed)

    # Small single-sample-ish batch (single-tile path).
    x = jax.random.normal(kx, (2, state_size), jnp.float32)
    out = dqn_forward(x, packed, state_size=state_size,
                      action_size=action_size)
    out = jax.block_until_ready(out)
    ref = dqn_forward_ref(x, params)
    assert out.shape == (2, action_size), out.shape
    assert jnp.allclose(out, ref, atol=5e-2, rtol=5e-2), (out, ref)

    # Replay-buffer-sized batch (two-tile / dual-TensorCore path).
    x2 = jax.random.normal(kx2, (64, state_size), jnp.float32)
    out2 = dqn_forward(x2, packed, state_size=state_size,
                       action_size=action_size)
    out2 = jax.block_until_ready(out2)
    ref2 = dqn_forward_ref(x2, params)
    assert out2.shape == (64, action_size), out2.shape
    assert jnp.allclose(out2, ref2, atol=5e-2, rtol=5e-2), (out2, ref2)

    print("KERNEL_OK")
</pallas_src>

<mosaic_0001>
module attributes {stable_mosaic.version = 11 : i64} {
  func.func @_dqn_mlp_kernel(%arg0: i32, %arg1: memref<8x4xf32, #tpu.memory_space<vmem>>, %arg2: memref<4x128xf32, #tpu.memory_space<vmem>>, %arg3: memref<1x128xf32, #tpu.memory_space<vmem>>, %arg4: memref<128x128xf32, #tpu.memory_space<vmem>>, %arg5: memref<1x128xf32, #tpu.memory_space<vmem>>, %arg6: memref<128x128xf32, #tpu.memory_space<vmem>>, %arg7: memref<1x128xf32, #tpu.memory_space<vmem>>, %arg8: memref<8x2xf32, #tpu.memory_space<vmem>>) attributes {dimension_semantics = [#tpu.dimension_semantics<parallel>], iteration_bounds = array<i64: 1>, scalar_prefetch = 0 : i64, scratch_operands = 0 : i64, tpu.core_type = #tpu.core_type<tc>, window_params = [{transform_indices = @transform_0, window_bounds = array<i64: 8, 4>}, {pipeline_mode = #tpu.pipeline_mode<synchronous>, transform_indices = @transform_1, window_bounds = array<i64: 4, 128>}, {pipeline_mode = #tpu.pipeline_mode<synchronous>, transform_indices = @transform_2, window_bounds = array<i64: 1, 128>}, {pipeline_mode = #tpu.pipeline_mode<synchronous>, transform_indices = @transform_3, window_bounds = array<i64: 128, 128>}, {pipeline_mode = #tpu.pipeline_mode<synchronous>, transform_indices = @transform_4, window_bounds = array<i64: 1, 128>}, {pipeline_mode = #tpu.pipeline_mode<synchronous>, transform_indices = @transform_5, window_bounds = array<i64: 128, 128>}, {pipeline_mode = #tpu.pipeline_mode<synchronous>, transform_indices = @transform_6, window_bounds = array<i64: 1, 128>}, {transform_indices = @transform_7, window_bounds = array<i64: 8, 2>}]} {
    %c0 = arith.constant 0 : index
    %c0_0 = arith.constant 0 : index
    %0 = vector.load %arg1[%c0, %c0_0] : memref<8x4xf32, #tpu.memory_space<vmem>>, vector<8x4xf32>
    %c0_1 = arith.constant 0 : index
    %c0_2 = arith.constant 0 : index
    %1 = vector.load %arg2[%c0_1, %c0_2] : memref<4x128xf32, #tpu.memory_space<vmem>>, vector<4x128xf32>
    %c0_3 = arith.constant 0 : index
    %c0_4 = arith.constant 0 : index
    %2 = vector.load %arg3[%c0_3, %c0_4] : memref<1x128xf32, #tpu.memory_space<vmem>>, vector<1x128xf32>
    %3 = vector.extract_strided_slice %0 {offsets = [0, 0], sizes = [8, 1], strides = [1, 1]} : vector<8x4xf32> to vector<8x1xf32>
    %4 = vector.extract_strided_slice %1 {offsets = [0, 0], sizes = [1, 128], strides = [1, 1]} : vector<4x128xf32> to vector<1x128xf32>
    %5 = vector.broadcast %3 : vector<8x1xf32> to vector<8x128xf32>
    %6 = vector.broadcast %4 : vector<1x128xf32> to vector<8x128xf32>
    %7 = arith.mulf %5, %6 : vector<8x128xf32>
    %8 = vector.broadcast %2 : vector<1x128xf32> to vector<8x128xf32>
    %9 = arith.addf %8, %7 : vector<8x128xf32>
    %10 = vector.extract_strided_slice %0 {offsets = [0, 1], sizes = [8, 1], strides = [1, 1]} : vector<8x4xf32> to vector<8x1xf32>
    %11 = vector.extract_strided_slice %1 {offsets = [1, 0], sizes = [1, 128], strides = [1, 1]} : vector<4x128xf32> to vector<1x128xf32>
    %12 = vector.broadcast %10 : vector<8x1xf32> to vector<8x128xf32>
    %13 = vector.broadcast %11 : vector<1x128xf32> to vector<8x128xf32>
    %14 = arith.mulf %12, %13 : vector<8x128xf32>
    %15 = arith.addf %9, %14 : vector<8x128xf32>
    %16 = vector.extract_strided_slice %0 {offsets = [0, 2], sizes = [8, 1], strides = [1, 1]} : vector<8x4xf32> to vector<8x1xf32>
    %17 = vector.extract_strided_slice %1 {offsets = [2, 0], sizes = [1, 128], strides = [1, 1]} : vector<4x128xf32> to vector<1x128xf32>
    %18 = vector.broadcast %16 : vector<8x1xf32> to vector<8x128xf32>
    %19 = vector.broadcast %17 : vector<1x128xf32> to vector<8x128xf32>
    %20 = arith.mulf %18, %19 : vector<8x128xf32>
    %21 = arith.addf %15, %20 : vector<8x128xf32>
    %22 = vector.extract_strided_slice %0 {offsets = [0, 3], sizes = [8, 1], strides = [1, 1]} : vector<8x4xf32> to vector<8x1xf32>
    %23 = vector.extract_strided_slice %1 {offsets = [3, 0], sizes = [1, 128], strides = [1, 1]} : vector<4x128xf32> to vector<1x128xf32>
    %24 = vector.broadcast %22 : vector<8x1xf32> to vector<8x128xf32>
    %25 = vector.broadcast %23 : vector<1x128xf32> to vector<8x128xf32>
    %26 = arith.mulf %24, %25 : vector<8x128xf32>
    %27 = arith.addf %21, %26 : vector<8x128xf32>
    %cst = arith.constant 0.000000e+00 : f32
    %28 = vector.broadcast %cst : f32 to vector<8x128xf32>
    %29 = arith.maximumf %27, %28 : vector<8x128xf32>
    %c0_5 = arith.constant 0 : index
    %c0_6 = arith.constant 0 : index
    %30 = vector.load %arg4[%c0_5, %c0_6] : memref<128x128xf32, #tpu.memory_space<vmem>>, vector<128x128xf32>
    %cst_7 = arith.constant dense<0.000000e+00> : vector<8x128xf32>
    %31 = tpu.matmul %29, %30, %cst_7 {dimension_numbers = #tpu.dot_dimension_numbers<[1], [0], [0], [1], [0, 0, 1, 1], [], []>} : vector<8x128xf32>, vector<128x128xf32>, vector<8x128xf32> -> vector<8x128xf32>
    %c0_8 = arith.constant 0 : index
    %c0_9 = arith.constant 0 : index
    %32 = vector.load %arg5[%c0_8, %c0_9] : memref<1x128xf32, #tpu.memory_space<vmem>>, vector<1x128xf32>
    %33 = vector.broadcast %32 : vector<1x128xf32> to vector<8x128xf32>
    %34 = arith.addf %31, %33 : vector<8x128xf32>
    %cst_10 = arith.constant 0.000000e+00 : f32
    %35 = vector.broadcast %cst_10 : f32 to vector<8x128xf32>
    %36 = arith.maximumf %34, %35 : vector<8x128xf32>
    %c0_11 = arith.constant 0 : index
    %c0_12 = arith.constant 0 : index
    %37 = vector.load %arg6[%c0_11, %c0_12] : memref<128x128xf32, #tpu.memory_space<vmem>>, vector<128x128xf32>
    %cst_13 = arith.constant dense<0.000000e+00> : vector<8x128xf32>
    %38 = tpu.matmul %36, %37, %cst_13 {dimension_numbers = #tpu.dot_dimension_numbers<[1], [0], [0], [1], [0, 0, 1, 1], [], []>} : vector<8x128xf32>, vector<128x128xf32>, vector<8x128xf32> -> vector<8x128xf32>
    %c0_14 = arith.constant 0 : index
    %c0_15 = arith.constant 0 : index
    %39 = vector.load %arg7[%c0_14, %c0_15] : memref<1x128xf32, #tpu.memory_space<vmem>>, vector<1x128xf32>
    %40 = vector.broadcast %39 : vector<1x128xf32> to vector<8x128xf32>
    %41 = arith.addf %38, %40 : vector<8x128xf32>
    %42 = vector.extract_strided_slice %41 {offsets = [0, 0], sizes = [8, 2], strides = [1, 1]} : vector<8x128xf32> to vector<8x2xf32>
    %c0_16 = arith.constant 0 : index
    %c0_17 = arith.constant 0 : index
    %43 = vector.load %arg8[%c0_16, %c0_17] : memref<8x2xf32, #tpu.memory_space<vmem>>, vector<8x2xf32>
    tpu.vector_store %arg8[%c0_16, %c0_17], %42 {strides = array<i32>} : memref<8x2xf32, #tpu.memory_space<vmem>>, vector<8x2xf32>,
    return
  }
  func.func @transform_0(%arg0: i32) -> (i32, i32) {
    %c0_i32 = arith.constant 0 : i32
    %c0_i32_0 = arith.constant 0 : i32
    return %arg0, %c0_i32 : i32, i32
  }
  func.func @transform_1(%arg0: i32) -> (i32, i32) {
    %c0_i32 = arith.constant 0 : i32
    %c0_i32_0 = arith.constant 0 : i32
    %c0_i32_1 = arith.constant 0 : i32
    return %c0_i32, %c0_i32_0 : i32, i32
  }
  func.func @transform_2(%arg0: i32) -> (i32, i32) {
    %c0_i32 = arith.constant 0 : i32
    %c0_i32_0 = arith.constant 0 : i32
    %c0_i32_1 = arith.constant 0 : i32
    return %c0_i32, %c0_i32_0 : i32, i32
  }
  func.func @transform_3(%arg0: i32) -> (i32, i32) {
    %c0_i32 = arith.constant 0 : i32
    %c0_i32_0 = arith.constant 0 : i32
    %c0_i32_1 = arith.constant 0 : i32
    return %c0_i32, %c0_i32_0 : i32, i32
  }
  func.func @transform_4(%arg0: i32) -> (i32, i32) {
    %c0_i32 = arith.constant 0 : i32
    %c0_i32_0 = arith.constant 0 : i32
    %c0_i32_1 = arith.constant 0 : i32
    return %c0_i32, %c0_i32_0 : i32, i32
  }
  func.func @transform_5(%arg0: i32) -> (i32, i32) {
    %c0_i32 = arith.constant 0 : i32
    %c0_i32_0 = arith.constant 0 : i32
    %c0_i32_1 = arith.constant 0 : i32
    return %c0_i32, %c0_i32_0 : i32, i32
  }
  func.func @transform_6(%arg0: i32) -> (i32, i32) {
    %c0_i32 = arith.constant 0 : i32
    %c0_i32_0 = arith.constant 0 : i32
    %c0_i32_1 = arith.constant 0 : i32
    return %c0_i32, %c0_i32_0 : i32, i32
  }
  func.func @transform_7(%arg0: i32) -> (i32, i32) {
    %c0_i32 = arith.constant 0 : i32
    %c0_i32_0 = arith.constant 0 : i32
    return %arg0, %c0_i32 : i32, i32
  }
}

</mosaic_0001>

<bundles_post_ra>
// kernel: dqn_forward.1
= control target key start
LH: loop header
LB: loop body
LE: loop exit
PB: predicated region body
PF: predicated region fallthrough
CT: control target
= control target key end

     0   :  { %12 = vsyncpa [#allocation3], 0  ;;  %s574_s0 = inlined_call_operand.vmem [shape: f32[8,4], index: 0, kind: input, shape index: {}]   ;;  %s575_s1 = inlined_call_operand.vmem [shape: f32[4,128], index: 1, kind: input, shape index: {}]   ;;  %s576_s2 = inlined_call_operand.vmem [shape: f32[1,128], index: 2, kind: input, shape index: {}]   ;;  %s577_s3 = inlined_call_operand.hbm [shape: f32[128,128], index: 3, kind: input, shape index: {}]   ;;  %s578_s4 = inlined_call_operand.vmem [shape: f32[1,128], index: 4, kind: input, shape index: {}]   ;;  %s579_s5 = inlined_call_operand.hbm [shape: f32[128,128], index: 5, kind: input, shape index: {}]   ;;  %s580_s6 = inlined_call_operand.vmem [shape: f32[1,128], index: 6, kind: input, shape index: {}]   ;;  %s581_s7 = inlined_call_operand.vmem [shape: f32[8,2], index: 7, kind: output, shape index: {}]  }
   0x1   :  { %13 = vsyncpa [#allocation5], 0  ;;  %s466_s24 = smov [#allocation2]  }
   0x2   :  { %s25_s25 = sshll.u32 %s466_s24, 4  ;;  %s26_s25 = int_to_ptr.vmem [resolvable:$true] %s25_s25 }
   0x3   :  { %s430_s26 = scalar_lea.vmem %s26_s25, 2048  ;;  %p435_p1 = scmp.lt.s32.totalorder %s26_s25, %s26_s25 }
   0x4   :  { %p431_p0 = scmp.ne.s32.totalorder %s26_s25, %s430_s26  ;;  %p436_p2 = scmp.lt.s32.totalorder %s430_s26, %s430_s26 }
   0x6   :  { %p437_p3 = por %p436_p2, %p435_p1 }
   0x8   :  { %p438_p4 = pnand %p437_p3, %p431_p0 }
   0xa   :  { %441 = shalt.err (!%p438_p4)
}
   0xb   :  { %s467_s27 = smov 128   ;;  %s468_s28 = smov 8  }
   0xc   :  { %31 = dma.hbm_to_vmem [thread:$0]  %s577_s3, 2048, %s26_s25, [#allocation3], %s467_s27, %s467_s27, %s468_s28  }
   0xd   :  { %s469_s8 = smov [#allocation4]  }
   0xe   :  { %s39_s9 = sshll.u32 %s469_s8, 4  ;;  %s40_s9 = int_to_ptr.vmem [resolvable:$true] %s39_s9 }
   0xf   :  { %s450_s10 = scalar_lea.vmem %s40_s9, 2048  ;;  %p455_p6 = scmp.lt.s32.totalorder %s40_s9, %s40_s9 }
  0x10   :  { %p451_p5 = scmp.ne.s32.totalorder %s40_s9, %s450_s10  ;;  %p456_p7 = scmp.lt.s32.totalorder %s450_s10, %s450_s10 }
  0x12   :  { %p457_p8 = por %p456_p7, %p455_p6 }
  0x14   :  { %p458_p9 = pnand %p457_p8, %p451_p5 }
  0x16   :  { %461 = shalt.err (!%p458_p9)
}
  0x17   :  { %45 = dma.hbm_to_vmem [thread:$0]  %s579_s5, 2048, %s40_s9, [#allocation5], %s467_s27, %s467_s27, %s468_s28  }
  0x18   :  { %462 = dma.done.wait [#allocation3], 2048  }
  0x19   :  { %463 = vsyncadd [#allocation3], 4294965248 }
  0x1a   :  { %464 = dma.done.wait [#allocation5], 2048  }
  0x1b   :  { %465 = vsyncadd [#allocation5], 4294965248  ;;  %v470_v0 = vmov 0   ;;  %v471_v1 = vmov 2   ;;  %v472_v2 = vmov 0.0   ;;  %v54_v3 = vld [vmem:[%s574_s0] sm:$0xff]  ;;  %v62_v35 = vlaneseq }
  0x1c   :  { %417 = vset.pattern.permute.xlu0 %v470_v0  ;;  %419 = vset.pattern.permute.xlu1 %v471_v1  ;;  %v120_v4 = vld [vmem:[#allocation2 + $0x78] sm:$0xff]  ;;  %v119_v5 = vld [vmem:[#allocation2 + $0x70] sm:$0xff]  ;;  %v473_v6 = vmov 1   ;;  %v474_v7 = vmov 3   ;;  %v118_v8 = vld [vmem:[#allocation2 + $0x68] sm:$0xff]  ;;  %vm475_vm0 = vmmov 0  }
  0x1d   :  { %337 = vmatprep.subr.mxu0 %v472_v2  ;;  %372 = vmatprep.subr.mxu1 %v472_v2  ;;  %v117_v9 = vld [vmem:[#allocation2 + $0x60] sm:$0xff]  ;;  %v116_v10 = vld [vmem:[#allocation2 + $0x58] sm:$0xff]  ;;  %v115_v11 = vld [vmem:[#allocation2 + $0x50] sm:$0xff]  ;;  %v63_v36 = vshrl.u32 %v62_v35, 7  ;;  %vm292_vm1 = vcmask 15360  }
  0x1e   :  { %59 = vperm.xlu0 %417, %v54_v3   ;;  %85 = vperm.xlu1 %419, %v54_v3   ;;  %v214_v12 = vld [vmem:[#allocation4 + $0x78] sm:$0xff]  ;;  %v213_v13 = vld [vmem:[#allocation4 + $0x70] sm:$0xff]  ;;  %v114_v14 = vld [vmem:[#allocation2 + $0x48] sm:$0xff] }
  0x1f   :  { %338 = vmatpush3.msra.mxu0 %v120_v4  ;;  %369 = vmatprep.mubr.msk.f32.mxu0 %vm475_vm0, %v472_v2  ;;  %v212_v15 = vld [vmem:[#allocation4 + $0x68] sm:$0xff]  ;;  %v113_v16 = vld [vmem:[#allocation2 + $0x40] sm:$0xff]  ;;  %v112_v18 = vld [vmem:[#allocation2 + $0x38] sm:$0xff]  ;;  %v64_v37 = vsub.s32 0, %v63_v36  ;;  %v80_v40 = vsub.s32 1, %v63_v36  ;;  %v90_v42 = vsub.s32 2, %v63_v36 }
  0x20   :  { %339 = vmatprep.subr.mxu0 %v472_v2  ;;  %404 = vmatprep.mubr.msk.f32.mxu1 %vm475_vm0, %v472_v2  ;;  %v211_v17 = vld [vmem:[#allocation4 + $0x60] sm:$0xff]  ;;  %v210_v19 = vld [vmem:[#allocation4 + $0x58] sm:$0xff]  ;;  %v111_v20 = vld [vmem:[#allocation2 + $0x30] sm:$0xff]  ;;  %v100_v44 = vsub.s32 3, %v63_v36 }
  0x21   :  { %340 = vmatpush3.msra.mxu0 %v119_v5  ;;  %373 = vmatpush3.msra.mxu1 %v214_v12  ;;  %v209_v21 = vld [vmem:[#allocation4 + $0x50] sm:$0xff]  ;;  %v110_v22 = vld [vmem:[#allocation2 + $0x28] sm:$0xff]  ;;  %v109_v24 = vld [vmem:[#allocation2 + $0x20] sm:$0xff] }
  0x22   :  { %418 = vset.pattern.permute.xlu0 %v473_v6  ;;  %420 = vset.pattern.permute.xlu1 %v474_v7  ;;  %v208_v23 = vld [vmem:[#allocation4 + $0x48] sm:$0xff]  ;;  %v207_v25 = vld [vmem:[#allocation4 + $0x40] sm:$0xff]  ;;  %v108_v26 = vld [vmem:[#allocation2 + $0x18] sm:$0xff] }
  0x23   :  { %75 = vperm.xlu0 %418, %v54_v3   ;;  %95 = vperm.xlu1 %420, %v54_v3   ;;  %v206_v27 = vld [vmem:[#allocation4 + $0x38] sm:$0xff]  ;;  %v107_v28 = vld [vmem:[#allocation2 + $0x10] sm:$0xff]  ;;  %v106_v30 = vld [vmem:[#allocation2 + $0x8] sm:$0xff] }
  0x24   :  { %341 = vmatprep.subr.mxu0 %v472_v2  ;;  %374 = vmatprep.subr.mxu1 %v472_v2  ;;  %v205_v29 = vld [vmem:[#allocation4 + $0x30] sm:$0xff]  ;;  %v204_v31 = vld [vmem:[#allocation4 + $0x28] sm:$0xff]  ;;  %v105_v32 = vld [vmem:[#allocation2] sm:$0xff] }
  0x25   :  { %342 = vmatpush3.msra.mxu0 %v118_v8  ;;  %375 = vmatpush3.msra.mxu1 %v213_v13  ;;  %v203_v33 = vld [vmem:[#allocation4 + $0x20] sm:$0xff]  ;;  %v202_v34 = vld [vmem:[#allocation4 + $0x18] sm:$0xff]  ;;  %v201_v60 = vld [vmem:[#allocation4 + $0x10] sm:$0xff] }
  0x26   :  { %343 = vmatprep.subr.mxu0 %v472_v2  ;;  %376 = vmatprep.subr.mxu1 %v472_v2  ;;  %v55_v38 = vld [vmem:[%s575_s1] sm:$0xf]  ;;  %v200_v61 = vld [vmem:[#allocation4 + $0x8] sm:$0xff] }
  0x27   :  { %344 = vmatpush3.msra.mxu0 %v117_v9  ;;  %421 = vset.pattern.permute.xlu0 %v474_v7  ;;  %v65_v39 = vrot.slane %v55_v38, %v64_v37  ;;  %v81_v46 = vrot.slane %v55_v38, %v80_v40  ;;  %v300_v47 = vld [vmem:[%s576_s2] ss:$0 sm:$0xff]  ;;  %v91_v48 = vrot.slane %v55_v38, %v90_v42 }
  0x28   :  { %345 = vmatprep.subr.mxu0 %v472_v2  ;;  %377 = vmatpush3.msra.mxu1 %v212_v15  ;;  %v101_v49 = vrot.slane %v55_v38, %v100_v44  ;;  %v199_v62 = vld [vmem:[#allocation4] sm:$0xff] }
  0x29   :  { %346 = vmatpush3.msra.mxu0 %v116_v10  ;;  %378 = vmatprep.subr.mxu1 %v472_v2  ;;  %v301_v63 = vld [vmem:[%s578_s4] ss:$0 sm:$0xff] }
  0x2a   :  { %347 = vmatprep.subr.mxu0 %v472_v2  ;;  %379 = vmatpush3.msra.mxu1 %v211_v17  ;;  %v302_v5 = vld [vmem:[%s580_s6] ss:$0 sm:$0xff] }
  0x2b   :  { %348 = vmatpush3.msra.mxu0 %v115_v11  ;;  %380 = vmatprep.subr.mxu1 %v472_v2 }
  0x2c   :  { %349 = vmatprep.subr.mxu0 %v472_v2  ;;  %381 = vmatpush3.msra.mxu1 %v210_v19 }
  0x2d   :  { %350 = vmatpush3.msra.mxu0 %v114_v14  ;;  %382 = vmatprep.subr.mxu1 %v472_v2 }
  0x2e   :  { %351 = vmatprep.subr.mxu0 %v472_v2  ;;  %383 = vmatpush3.msra.mxu1 %v209_v21 }
  0x2f   :  { %352 = vmatpush3.msra.mxu0 %v113_v16  ;;  %384 = vmatprep.subr.mxu1 %v472_v2 }
  0x30   :  { %353 = vmatprep.subr.mxu0 %v472_v2  ;;  %385 = vmatpush3.msra.mxu1 %v208_v23 }
  0x31   :  { %354 = vmatpush3.msra.mxu0 %v112_v18  ;;  %386 = vmatprep.subr.mxu1 %v472_v2 }
  0x32   :  { %355 = vmatprep.subr.mxu0 %v472_v2  ;;  %387 = vmatpush3.msra.mxu1 %v207_v25 }
  0x33   :  { %356 = vmatpush3.msra.mxu0 %v111_v20  ;;  %388 = vmatprep.subr.mxu1 %v472_v2 }
  0x34   :  { %357 = vmatprep.subr.mxu0 %v472_v2  ;;  %389 = vmatpush3.msra.mxu1 %v206_v27 }
  0x35   :  { %358 = vmatpush3.msra.mxu0 %v110_v22  ;;  %390 = vmatprep.subr.mxu1 %v472_v2 }
  0x36   :  { %359 = vmatprep.subr.mxu0 %v472_v2  ;;  %391 = vmatpush3.msra.mxu1 %v205_v29 }
  0x37   :  { %360 = vmatpush3.msra.mxu0 %v109_v24  ;;  %392 = vmatprep.subr.mxu1 %v472_v2 }
  0x38   :  { %361 = vmatprep.subr.mxu0 %v472_v2  ;;  %393 = vmatpush3.msra.mxu1 %v204_v31 }
  0x39   :  { %362 = vmatpush3.msra.mxu0 %v108_v26  ;;  %394 = vmatprep.subr.mxu1 %v472_v2 }
  0x3a   :  { %363 = vmatprep.subr.mxu0 %v472_v2  ;;  %395 = vmatpush3.msra.mxu1 %v203_v33 }
  0x3b   :  { %364 = vmatpush3.msra.mxu0 %v107_v28  ;;  %396 = vmatprep.subr.mxu1 %v472_v2 }
  0x3c   :  { %365 = vmatprep.subr.mxu0 %v472_v2  ;;  %397 = vmatpush3.msra.mxu1 %v202_v34 }
  0x3d   :  { %366 = vmatpush3.msra.mxu0 %v106_v30  ;;  %398 = vmatprep.subr.mxu1 %v472_v2 }
  0x3e   :  { %367 = vmatprep.subr.mxu0 %v472_v2  ;;  %399 = vmatpush3.msra.mxu1 %v201_v60 }
  0x3f   :  { %368 = vmatpush3.msra.mxu0 %v105_v32  ;;  %400 = vmatprep.subr.mxu1 %v472_v2 }
  0x40   :  { %401 = vmatpush3.msra.mxu1 %v200_v61 }
  0x41   :  { %402 = vmatprep.subr.mxu1 %v472_v2 }
  0x42   :  { %403 = vmatpush3.msra.mxu1 %v199_v62 }
  0x99   :  { %v60_v41 = vpop.permute.xlu0 %59  ;;  %v86_v43 = vpop.permute.xlu1 %85 }
  0x9a   :  { %v66_v45 = vmul.f32 %v65_v39, %v60_v41  ;;  %v92_v54 = vmul.f32 %v91_v48, %v86_v43 }
  0x9c   :  { %v73_v52 = vadd.f32 %v300_v47, %v66_v45 }
  0x9e   :  { %v76_v50 = vpop.permute.xlu0 %75  ;;  %v96_v51 = vpop.permute.xlu1 %95 }
  0x9f   :  { %v82_v53 = vmul.f32 %v81_v46, %v76_v50  ;;  %v102_v56 = vmul.f32 %v101_v49, %v96_v51 }
  0xa1   :  { %v83_v55 = vadd.f32 %v82_v53, %v73_v52 }
  0xa3   :  { %v93_v57 = vadd.f32 %v92_v54, %v83_v55 }
  0xa5   :  { %v103_v58 = vadd.f32 %v102_v56, %v93_v57 }
  0xa7   :  { %v104_v59 = vmax.f32 %v103_v58, 0.0 }
  0xa9   :  { %370 = vmatmul.mubr.f32.vlgmr.msra.gmra.mxu0 %v104_v59 }
 0x169   :  { %v194_v0 = vpop.f32.mrf.mxu0 }
 0x16a   :  { %v195_v1 = vadd.f32 %v301_v63, %v194_v0 }
 0x16b   :  { %v371_v3 = vpop.f32.mrf.mxu0 }
 0x16c   :  { %v198_v4 = vmax.f32 %v195_v1, 0.0 }
 0x16e   :  { %405 = vmatmul.mubr.f32.vlgmr.msra.gmra.mxu1 %v198_v4 }
 0x22e   :  { %v288_v6 = vpop.f32.mrf.mxu1 }
 0x22f   :  { %v289_v7 = vadd.f32 %v302_v5, %v288_v6 }
 0x230   :  { %v406_v8 = vpop.f32.mrf.mxu1 }
 0x231   :  { %293 = vst.msk [vmem:[%s581_s7] sm:$0xff] %vm292_vm1, %v289_v7 }
 0x232   :  { %298 = vsyncpa [#allocation3], 1 }
 0x233   :  { %299 = vsyncpa [#allocation5], 1 }

</bundles_post_ra>
